<compile_context>
chip_gen: v6e
topology: v6e:2x2x1
jax: 0.10.0
libtpu: 0.0.40
codegen_flags: <defaults>
</compile_context>

<pallas_src>
import jax
import jax.numpy as jnp
from jax.experimental import pallas as pl
from jax.experimental.pallas import tpu as pltpu


LANE = 128      # TPU lane width (last dim)
SUBLANE = 8     # TPU sublane width (second-to-last dim, f32)


def _round_up(x, m):
    return ((x + m - 1) // m) * m


def _pad2d(a, rows, cols):
    r, c = a.shape
    return jnp.pad(a, ((0, rows - r), (0, cols - c)))


# ----------------------------- fused Pallas kernel ----------------------------

def fused_gcn_kernel(onehot_ref, embed_ref, adj_ref,
                     w1_ref, wstack_ref, mw2_ref, bias_ref, pool_ref,
                     out_ref):
    """Whole GCN forward, single VMEM-resident block.

    onehot: [Np, Fp] bf16   hard one-hot of x.argmax(dim=1)
    embed:  [Fp, Ep] bf16   embedding table
    adj:    [Np, Np] bf16   normalized dense adjacency, A_hat[dst, src]
    w1:     [Ep, Hp] bf16   conv1 weight
    wstack: [3, Hp, Hp] bf16  (conv2, conv3, mlp.0) weights
    mw2:    [Hp, Cp] bf16   mlp.2 weight
    bias:   [8, Bw] f32     rows 0..4 = (b1, b2, b3, mlp_b1, mlp_b2), lane-padded
    pool:   [Bp, Np] bf16   one-hot graph-membership matrix (global_add_pool)
    out:    [Bp, Cp] f32    logits
    """
    adj = adj_ref[...]              # loaded once, reused by all three conv layers
    biases = bias_ref[...]
    h_pad = wstack_ref.shape[-1]
    c_pad = mw2_ref.shape[-1]

    # embedding lookup as one-hot matmul (exact: one-hot rows have a single 1.0)
    x = jnp.dot(onehot_ref[...], embed_ref[...],
                preferred_element_type=jnp.float32).astype(jnp.bfloat16)

    def gcn_layer(h_bf16, w_bf16, b_row, relu):
        # out = A_hat @ (H @ W) + b  -- X@W first (feature width << node count),
        # bf16 operands on the MXU, f32 accumulation, bias/ReLU in f32.
        xw = jnp.dot(h_bf16, w_bf16, preferred_element_type=jnp.float32)
        h = jnp.dot(adj, xw.astype(jnp.bfloat16),
                    preferred_element_type=jnp.float32) + b_row
        if relu:
            h = jnp.maximum(h, 0.0)
        return h

    # conv1 -> ReLU -> dropout(eval: identity)
    h = gcn_layer(x, w1_ref[...], biases[0:1, :h_pad], relu=True)
    # conv2 -> ReLU -> dropout(eval: identity)
    h = gcn_layer(h.astype(jnp.bfloat16), wstack_ref[0], biases[1:2, :h_pad],
                  relu=True)
    # conv3
    h = gcn_layer(h.astype(jnp.bfloat16), wstack_ref[1], biases[2:3, :h_pad],
                  relu=False)

    # global_add_pool as one-hot matmul: [Bp, Np] @ [Np, Hp]
    g = jnp.dot(pool_ref[...], h.astype(jnp.bfloat16),
                preferred_element_type=jnp.float32)

    # MLP head: Linear -> ReLU -> Linear
    g = jnp.dot(g.astype(jnp.bfloat16), wstack_ref[2],
                preferred_element_type=jnp.float32) + biases[3:4, :h_pad]
    g = jnp.maximum(g, 0.0)
    g = jnp.dot(g.astype(jnp.bfloat16), mw2_ref[...],
                preferred_element_type=jnp.float32) + biases[4:5, :c_pad]
    out_ref[...] = g


# ------------------------------- glue (JAX) -----------------------------------

def build_normalized_adjacency(edge_index, edge_weight, num_nodes):
    """Dense D^{-1/2} (A + I_missing) D^{-1/2} with A[dst, src] = edge weight.

    Matches PyG gcn_norm(add_self_loops=True): a unit self-loop is added only
    for nodes that do not already have one (add_remaining_self_loops).
    """
    src, dst = edge_index[0], edge_index[1]
    a = jnp.zeros((num_nodes, num_nodes), jnp.float32)
    a = a.at[dst, src].add(edge_weight.astype(jnp.float32))
    diag = jnp.diagonal(a)
    a = a + jnp.diag(jnp.where(diag == 0.0, 1.0, 0.0))
    deg = a.sum(axis=1)  # weighted in-degree per dst (incl. self loop)
    dinv = jnp.where(deg > 0, jax.lax.rsqrt(deg), 0.0)
    return dinv[:, None] * a * dinv[None, :]


def init_params(key, num_node_features, embed_dim, hidden, num_classes):
    ks = jax.random.split(key, 12)
    def g(k, shape, scale=0.1):
        return (scale * jax.random.normal(k, shape)).astype(jnp.float32)
    return {
        "embedding": g(ks[0], (num_node_features, embed_dim), 1.0),
        "w1": g(ks[1], (embed_dim, hidden)), "b1": g(ks[2], (hidden,)),
        "w2": g(ks[3], (hidden, hidden)),    "b2": g(ks[4], (hidden,)),
        "w3": g(ks[5], (hidden, hidden)),    "b3": g(ks[6], (hidden,)),
        "mlp_w1": g(ks[7], (hidden, hidden)),      "mlp_b1": g(ks[8], (hidden,)),
        "mlp_w2": g(ks[9], (hidden, num_classes)), "mlp_b2": g(ks[10], (num_classes,)),
    }


def gcn_forward(params, x, edge_index, edge_weight, batch, num_graphs):
    n, num_feat = x.shape
    embed_dim = params["embedding"].shape[1]
    hidden = params["w1"].shape[1]
    num_classes = params["mlp_w2"].shape[1]

    # x.argmax(dim=1) -> hard one-hot; the actual embedding gather happens on
    # the MXU inside the kernel as onehot @ embedding_table.
    onehot = jax.nn.one_hot(jnp.argmax(x, axis=1), num_feat, dtype=jnp.float32)

    adj = build_normalized_adjacency(edge_index, edge_weight, n)     # [N, N] f32
    pool_mat = (batch[None, :] == jnp.arange(num_graphs)[:, None]).astype(jnp.float32)

    # ---- pad to lane/sublane-dense shapes (zero padding is exact, see header) ----
    n_pad = _round_up(n, LANE)
    f_pad = _round_up(num_feat, LANE)
    e_pad = _round_up(embed_dim, LANE)
    h_pad = _round_up(hidden, LANE)
    c_pad = _round_up(num_classes, LANE)
    b_pad = _round_up(num_graphs, SUBLANE)
    bw = max(h_pad, c_pad)

    bf = jnp.bfloat16
    onehot_p = _pad2d(onehot, n_pad, f_pad).astype(bf)
    embed_p = _pad2d(params["embedding"], f_pad, e_pad).astype(bf)
    adj_p = _pad2d(adj, n_pad, n_pad).astype(bf)
    w1_p = _pad2d(params["w1"], e_pad, h_pad).astype(bf)
    wstack = jnp.stack([
        _pad2d(params["w2"], h_pad, h_pad),
        _pad2d(params["w3"], h_pad, h_pad),
        _pad2d(params["mlp_w1"], h_pad, h_pad),
    ]).astype(bf)
    mw2_p = _pad2d(params["mlp_w2"], h_pad, c_pad).astype(bf)
    pool_p = _pad2d(pool_mat, b_pad, n_pad).astype(bf)

    def brow(name):
        v = params[name]
        return jnp.pad(v, (0, bw - v.shape[0]))
    bias_stack = jnp.zeros((SUBLANE, bw), jnp.float32)
    for i, name in enumerate(("b1", "b2", "b3", "mlp_b1", "mlp_b2")):
        bias_stack = bias_stack.at[i, :].set(brow(name))

    args = (onehot_p, embed_p, adj_p, w1_p, wstack, mw2_p, bias_stack, pool_p)

    vmem_spec = pl.BlockSpec(memory_space=pltpu.MemorySpace.VMEM)
    out_padded = pl.pallas_call(
        fused_gcn_kernel,
        out_shape=jax.ShapeDtypeStruct((b_pad, c_pad), jnp.float32),
        in_specs=[vmem_spec] * len(args),
        out_specs=vmem_spec,
        compiler_params=pltpu.CompilerParams(
            vmem_limit_bytes=32 * 1024 * 1024),   # explicit budget, fits v5e/v6e/v7x
    )(*args)

    return out_padded[:num_graphs, :num_classes]                     # [B, num_classes]


# --------------------------------- driver --------------------------------------

if __name__ == "__main__":
    NUM_NODE_FEATURES = 8
    EMBED_DIM = 50
    HIDDEN = 16
    NUM_CLASSES = 4
    NODES_PER_GRAPH = 8
    NUM_GRAPHS = 2
    N = NODES_PER_GRAPH * NUM_GRAPHS

    key = jax.random.PRNGKey(0)
    k_x, k_w, k_p = jax.random.split(key, 3)

    # one-hot-ish node features [N, F] (argmax picks the node's "type")
    x = jax.nn.one_hot(
        jax.random.randint(k_x, (N,), 0, NUM_NODE_FEATURES), NUM_NODE_FEATURES
    ).astype(jnp.float32)

    # ring graph per component, bidirectional edges
    srcs, dsts = [], []
    for g in range(NUM_GRAPHS):
        base = g * NODES_PER_GRAPH
        for i in range(NODES_PER_GRAPH):
            u = base + i
            v = base + (i + 1) % NODES_PER_GRAPH
            srcs += [u, v]
            dsts += [v, u]
    edge_index = jnp.array([srcs, dsts], dtype=jnp.int32)                # [2, E]
    edge_weight = 0.5 + jax.random.uniform(k_w, (edge_index.shape[1],))  # data.edge_attr
    batch = jnp.repeat(jnp.arange(NUM_GRAPHS, dtype=jnp.int32), NODES_PER_GRAPH)

    params = init_params(k_p, NUM_NODE_FEATURES, EMBED_DIM, HIDDEN, NUM_CLASSES)

    out = gcn_forward(params, x, edge_index, edge_weight, batch, NUM_GRAPHS)
    out = jax.block_until_ready(out)
    assert out.shape == (NUM_GRAPHS, NUM_CLASSES)
    assert jnp.all(jnp.isfinite(out))
    print("KERNEL_OK")
</pallas_src>

<mosaic_0001>
module attributes {stable_mosaic.version = 11 : i64} {
  func.func @fused_gcn_kernel(%arg0: memref<128x128xbf16, #tpu.memory_space<vmem>>, %arg1: memref<128x128xbf16, #tpu.memory_space<vmem>>, %arg2: memref<128x128xbf16, #tpu.memory_space<vmem>>, %arg3: memref<128x128xbf16, #tpu.memory_space<vmem>>, %arg4: memref<3x128x128xbf16, #tpu.memory_space<vmem>>, %arg5: memref<128x128xbf16, #tpu.memory_space<vmem>>, %arg6: memref<8x128xf32, #tpu.memory_space<vmem>>, %arg7: memref<8x128xbf16, #tpu.memory_space<vmem>>, %arg8: memref<8x128xf32, #tpu.memory_space<vmem>>) attributes {dimension_semantics = [], scalar_prefetch = 0 : i64, scratch_operands = 0 : i64, tpu.core_type = #tpu.core_type<tc>} {
    %c0 = arith.constant 0 : index
    %c0_0 = arith.constant 0 : index
    %0 = vector.load %arg2[%c0, %c0_0] : memref<128x128xbf16, #tpu.memory_space<vmem>>, vector<128x128xbf16>
    %c0_1 = arith.constant 0 : index
    %c0_2 = arith.constant 0 : index
    %1 = vector.load %arg6[%c0_1, %c0_2] : memref<8x128xf32, #tpu.memory_space<vmem>>, vector<8x128xf32>
    %c0_3 = arith.constant 0 : index
    %c0_4 = arith.constant 0 : index
    %2 = vector.load %arg0[%c0_3, %c0_4] : memref<128x128xbf16, #tpu.memory_space<vmem>>, vector<128x128xbf16>
    %c0_5 = arith.constant 0 : index
    %c0_6 = arith.constant 0 : index
    %3 = vector.load %arg1[%c0_5, %c0_6] : memref<128x128xbf16, #tpu.memory_space<vmem>>, vector<128x128xbf16>
    %cst = arith.constant dense<0.000000e+00> : vector<128x128xf32>
    %4 = tpu.matmul %2, %3, %cst {dimension_numbers = #tpu.dot_dimension_numbers<[1], [0], [0], [1], [0, 0, 1, 1], [], []>} : vector<128x128xbf16>, vector<128x128xbf16>, vector<128x128xf32> -> vector<128x128xf32>
    %5 = arith.truncf %4 : vector<128x128xf32> to vector<128x128xbf16>
    %c0_7 = arith.constant 0 : index
    %c0_8 = arith.constant 0 : index
    %6 = vector.load %arg3[%c0_7, %c0_8] : memref<128x128xbf16, #tpu.memory_space<vmem>>, vector<128x128xbf16>
    %7 = vector.extract_strided_slice %1 {offsets = [0, 0], sizes = [1, 128], strides = [1, 1]} : vector<8x128xf32> to vector<1x128xf32>
    %cst_9 = arith.constant dense<0.000000e+00> : vector<128x128xf32>
    %8 = tpu.matmul %5, %6, %cst_9 {dimension_numbers = #tpu.dot_dimension_numbers<[1], [0], [0], [1], [0, 0, 1, 1], [], []>} : vector<128x128xbf16>, vector<128x128xbf16>, vector<128x128xf32> -> vector<128x128xf32>
    %9 = arith.truncf %8 : vector<128x128xf32> to vector<128x128xbf16>
    %cst_10 = arith.constant dense<0.000000e+00> : vector<128x128xf32>
    %10 = tpu.matmul %0, %9, %cst_10 {dimension_numbers = #tpu.dot_dimension_numbers<[1], [0], [0], [1], [0, 0, 1, 1], [], []>} : vector<128x128xbf16>, vector<128x128xbf16>, vector<128x128xf32> -> vector<128x128xf32>
    %11 = vector.broadcast %7 : vector<1x128xf32> to vector<128x128xf32>
    %12 = arith.addf %10, %11 : vector<128x128xf32>
    %cst_11 = arith.constant 0.000000e+00 : f32
    %13 = vector.broadcast %cst_11 : f32 to vector<128x128xf32>
    %14 = arith.maximumf %12, %13 : vector<128x128xf32>
    %15 = arith.truncf %14 : vector<128x128xf32> to vector<128x128xbf16>
    %c0_12 = arith.constant 0 : index
    %c0_13 = arith.constant 0 : index
    %c0_14 = arith.constant 0 : index
    %16 = vector.load %arg4[%c0_12, %c0_13, %c0_14] : memref<3x128x128xbf16, #tpu.memory_space<vmem>>, vector<1x128x128xbf16>
    %17 = vector.shape_cast %16 : vector<1x128x128xbf16> to vector<128x128xbf16>
    %18 = vector.extract_strided_slice %1 {offsets = [1, 0], sizes = [1, 128], strides = [1, 1]} : vector<8x128xf32> to vector<1x128xf32>
    %cst_15 = arith.constant dense<0.000000e+00> : vector<128x128xf32>
    %19 = tpu.matmul %15, %17, %cst_15 {dimension_numbers = #tpu.dot_dimension_numbers<[1], [0], [0], [1], [0, 0, 1, 1], [], []>} : vector<128x128xbf16>, vector<128x128xbf16>, vector<128x128xf32> -> vector<128x128xf32>
    %20 = arith.truncf %19 : vector<128x128xf32> to vector<128x128xbf16>
    %cst_16 = arith.constant dense<0.000000e+00> : vector<128x128xf32>
    %21 = tpu.matmul %0, %20, %cst_16 {dimension_numbers = #tpu.dot_dimension_numbers<[1], [0], [0], [1], [0, 0, 1, 1], [], []>} : vector<128x128xbf16>, vector<128x128xbf16>, vector<128x128xf32> -> vector<128x128xf32>
    %22 = vector.broadcast %18 : vector<1x128xf32> to vector<128x128xf32>
    %23 = arith.addf %21, %22 : vector<128x128xf32>
    %cst_17 = arith.constant 0.000000e+00 : f32
    %24 = vector.broadcast %cst_17 : f32 to vector<128x128xf32>
    %25 = arith.maximumf %23, %24 : vector<128x128xf32>
    %26 = arith.truncf %25 : vector<128x128xf32> to vector<128x128xbf16>
    %c1 = arith.constant 1 : index
    %c0_18 = arith.constant 0 : index
    %c0_19 = arith.constant 0 : index
    %27 = vector.load %arg4[%c1, %c0_18, %c0_19] : memref<3x128x128xbf16, #tpu.memory_space<vmem>>, vector<1x128x128xbf16>
    %28 = vector.shape_cast %27 : vector<1x128x128xbf16> to vector<128x128xbf16>
    %29 = vector.extract_strided_slice %1 {offsets = [2, 0], sizes = [1, 128], strides = [1, 1]} : vector<8x128xf32> to vector<1x128xf32>
    %cst_20 = arith.constant dense<0.000000e+00> : vector<128x128xf32>
    %30 = tpu.matmul %26, %28, %cst_20 {dimension_numbers = #tpu.dot_dimension_numbers<[1], [0], [0], [1], [0, 0, 1, 1], [], []>} : vector<128x128xbf16>, vector<128x128xbf16>, vector<128x128xf32> -> vector<128x128xf32>
    %31 = arith.truncf %30 : vector<128x128xf32> to vector<128x128xbf16>
    %cst_21 = arith.constant dense<0.000000e+00> : vector<128x128xf32>
    %32 = tpu.matmul %0, %31, %cst_21 {dimension_numbers = #tpu.dot_dimension_numbers<[1], [0], [0], [1], [0, 0, 1, 1], [], []>} : vector<128x128xbf16>, vector<128x128xbf16>, vector<128x128xf32> -> vector<128x128xf32>
    %33 = vector.broadcast %29 : vector<1x128xf32> to vector<128x128xf32>
    %34 = arith.addf %32, %33 : vector<128x128xf32>
    %c0_22 = arith.constant 0 : index
    %c0_23 = arith.constant 0 : index
    %35 = vector.load %arg7[%c0_22, %c0_23] : memref<8x128xbf16, #tpu.memory_space<vmem>>, vector<8x128xbf16>
    %36 = arith.truncf %34 : vector<128x128xf32> to vector<128x128xbf16>
    %cst_24 = arith.constant dense<0.000000e+00> : vector<8x128xf32>
    %37 = tpu.matmul %35, %36, %cst_24 {dimension_numbers = #tpu.dot_dimension_numbers<[1], [0], [0], [1], [0, 0, 1, 1], [], []>} : vector<8x128xbf16>, vector<128x128xbf16>, vector<8x128xf32> -> vector<8x128xf32>
    %38 = arith.truncf %37 : vector<8x128xf32> to vector<8x128xbf16>
    %c2 = arith.constant 2 : index
    %c0_25 = arith.constant 0 : index
    %c0_26 = arith.constant 0 : index
    %39 = vector.load %arg4[%c2, %c0_25, %c0_26] : memref<3x128x128xbf16, #tpu.memory_space<vmem>>, vector<1x128x128xbf16>
    %40 = vector.shape_cast %39 : vector<1x128x128xbf16> to vector<128x128xbf16>
    %cst_27 = arith.constant dense<0.000000e+00> : vector<8x128xf32>
    %41 = tpu.matmul %38, %40, %cst_27 {dimension_numbers = #tpu.dot_dimension_numbers<[1], [0], [0], [1], [0, 0, 1, 1], [], []>} : vector<8x128xbf16>, vector<128x128xbf16>, vector<8x128xf32> -> vector<8x128xf32>
    %42 = vector.extract_strided_slice %1 {offsets = [3, 0], sizes = [1, 128], strides = [1, 1]} : vector<8x128xf32> to vector<1x128xf32>
    %43 = vector.broadcast %42 : vector<1x128xf32> to vector<8x128xf32>
    %44 = arith.addf %41, %43 : vector<8x128xf32>
    %cst_28 = arith.constant 0.000000e+00 : f32
    %45 = vector.broadcast %cst_28 : f32 to vector<8x128xf32>
    %46 = arith.maximumf %44, %45 : vector<8x128xf32>
    %47 = arith.truncf %46 : vector<8x128xf32> to vector<8x128xbf16>
    %c0_29 = arith.constant 0 : index
    %c0_30 = arith.constant 0 : index
    %48 = vector.load %arg5[%c0_29, %c0_30] : memref<128x128xbf16, #tpu.memory_space<vmem>>, vector<128x128xbf16>
    %cst_31 = arith.constant dense<0.000000e+00> : vector<8x128xf32>
    %49 = tpu.matmul %47, %48, %cst_31 {dimension_numbers = #tpu.dot_dimension_numbers<[1], [0], [0], [1], [0, 0, 1, 1], [], []>} : vector<8x128xbf16>, vector<128x128xbf16>, vector<8x128xf32> -> vector<8x128xf32>
    %50 = vector.extract_strided_slice %1 {offsets = [4, 0], sizes = [1, 128], strides = [1, 1]} : vector<8x128xf32> to vector<1x128xf32>
    %51 = vector.broadcast %50 : vector<1x128xf32> to vector<8x128xf32>
    %52 = arith.addf %49, %51 : vector<8x128xf32>
    %c0_32 = arith.constant 0 : index
    %c0_33 = arith.constant 0 : index
    %53 = vector.load %arg8[%c0_32, %c0_33] : memref<8x128xf32, #tpu.memory_space<vmem>>, vector<8x128xf32>
    tpu.vector_store %arg8[%c0_32, %c0_33], %52 {strides = array<i32>} : memref<8x128xf32, #tpu.memory_space<vmem>>, vector<8x128xf32>,
    return
  }
}

</mosaic_0001>

<bundles_post_ra>
// kernel: tpu_custom_call.1
= control target key start
LH: loop header
LB: loop body
LE: loop exit
PB: predicated region body
PF: predicated region fallthrough
CT: control target
= control target key end

     0   :  { %13 = vsyncpa [#allocation3], 0  ;;  %s2455_s0 = inlined_call_operand.hbm [shape: bf16[128,128], index: 0, kind: input, shape index: {}]   ;;  %s2456_s1 = inlined_call_operand.hbm [shape: bf16[128,128], index: 1, kind: input, shape index: {}]   ;;  %s2457_s2 = inlined_call_operand.hbm [shape: bf16[128,128], index: 2, kind: input, shape index: {}]   ;;  %s2458_s3 = inlined_call_operand.hbm [shape: bf16[128,128], index: 3, kind: input, shape index: {}]   ;;  %s2459_s4 = inlined_call_operand.hbm [shape: bf16[3,128,128], index: 4, kind: input, shape index: {}]   ;;  %s2460_s5 = inlined_call_operand.hbm [shape: bf16[128,128], index: 5, kind: input, shape index: {}]   ;;  %s2461_s6 = inlined_call_operand.vmem [shape: f32[8,128], index: 6, kind: input, shape index: {}]   ;;  %s2462_s7 = inlined_call_operand.vmem [shape: bf16[8,128], index: 7, kind: input, shape index: {}]   ;;  %s2463_s8 = inlined_call_operand.hbm [shape: f32[8,128], index: 8, kind: output, shape index: {}]  }
   0x1   :  { %14 = vsyncpa [#allocation6], 0 }
   0x2   :  { %15 = vsyncpa [#allocation9], 0 }
   0x3   :  { %16 = vsyncpa [#allocation12], 0 }
   0x4   :  { %17 = vsyncpa [#allocation4], 0  ;;  %s2270_s27 = smov [#allocation5]   ;;  %s2271_s29 = smov [#allocation8]  }
   0x5   :  { %s35_s28 = sshll.u32 %s2270_s27, 4  ;;  %s59_s30 = sshll.u32 %s2271_s29, 4  ;;  %s36_s28 = int_to_ptr.vmem [resolvable:$true] %s35_s28  ;;  %s60_s30 = int_to_ptr.vmem [resolvable:$true] %s59_s30 }
   0x6   :  { %s2128_s9 = scalar_lea.vmem %s36_s28, 1024  ;;  %p2133_p1 = scmp.lt.s32.totalorder %s36_s28, %s36_s28 }
   0x7   :  { %p2129_p0 = scmp.ne.s32.totalorder %s36_s28, %s2128_s9  ;;  %p2134_p2 = scmp.lt.s32.totalorder %s2128_s9, %s2128_s9 }
   0x9   :  { %p2135_p3 = por %p2134_p2, %p2133_p1 }
   0xb   :  { %p2136_p4 = pnand %p2135_p3, %p2129_p0 }
   0xd   :  { %2139 = shalt.err (!%p2136_p4)
}
   0xe   :  { %s2272_s10 = smov 64   ;;  %s2273_s11 = smov 4  }
   0xf   :  { %41 = dma.hbm_to_vmem [thread:$0]  %s2456_s1, 1024, %s36_s28, [#allocation6], %s2272_s10, %s2272_s10, %s2273_s11  }
  0x10   :  { %s2148_s14 = scalar_lea.vmem %s60_s30, 1024  ;;  %p2153_p6 = scmp.lt.s32.totalorder %s60_s30, %s60_s30 }
  0x11   :  { %p2149_p5 = scmp.ne.s32.totalorder %s60_s30, %s2148_s14  ;;  %p2154_p7 = scmp.lt.s32.totalorder %s2148_s14, %s2148_s14 }
  0x13   :  { %p2155_p8 = por %p2154_p7, %p2153_p6 }
  0x15   :  { %p2156_p9 = pnand %p2155_p8, %p2149_p5 }
  0x17   :  { %2159 = shalt.err (!%p2156_p9)
}
  0x18   :  { %65 = dma.hbm_to_vmem [thread:$0]  %s2458_s3, 1024, %s60_s30, [#allocation9], %s2272_s10, %s2272_s10, %s2273_s11  }
  0x19   :  { %s2274_s17 = smov [#allocation2]   ;;  %s2275_s19 = smov [#allocation7]  }
  0x1a   :  { %s23_s18 = sshll.u32 %s2274_s17, 4  ;;  %s47_s20 = sshll.u32 %s2275_s19, 4  ;;  %s24_s18 = int_to_ptr.vmem [resolvable:$true] %s23_s18  ;;  %s48_s20 = int_to_ptr.vmem [resolvable:$true] %s47_s20 }
  0x1b   :  { %s2168_s1 = scalar_lea.vmem %s24_s18, 1024  ;;  %p2173_p11 = scmp.lt.s32.totalorder %s24_s18, %s24_s18 }
  0x1c   :  { %p2169_p10 = scmp.ne.s32.totalorder %s24_s18, %s2168_s1  ;;  %p2174_p12 = scmp.lt.s32.totalorder %s2168_s1, %s2168_s1 }
  0x1e   :  { %p2175_p13 = por %p2174_p12, %p2173_p11 }
  0x20   :  { %p2176_p0 = pnand %p2175_p13, %p2169_p10 }
  0x22   :  { %2179 = shalt.err (!%p2176_p0)
}
  0x23   :  { %29 = dma.hbm_to_vmem [thread:$0]  %s2455_s0, 1024, %s24_s18, [#allocation3], %s2272_s10, %s2272_s10, %s2273_s11  }
  0x24   :  { %s2188_s3 = scalar_lea.vmem %s48_s20, 1024  ;;  %p2193_p2 = scmp.lt.s32.totalorder %s48_s20, %s48_s20 }
  0x25   :  { %p2189_p1 = scmp.ne.s32.totalorder %s48_s20, %s2188_s3  ;;  %p2194_p3 = scmp.lt.s32.totalorder %s2188_s3, %s2188_s3 }
  0x27   :  { %p2195_p4 = por %p2194_p3, %p2193_p2 }
  0x29   :  { %p2196_p5 = pnand %p2195_p4, %p2189_p1 }
  0x2b   :  { %2199 = shalt.err (!%p2196_p5)
}
  0x2c   :  { %53 = dma.hbm_to_vmem [thread:$0]  %s2457_s2, 1024, %s48_s20, [#allocation6], %s2272_s10, %s2272_s10, %s2273_s11  }
  0x2d   :  { %s2276_s25 = smov [#allocation10]   ;;  %s2277_s27 = smov [#allocation11]  }
  0x2e   :  { %s71_s26 = sshll.u32 %s2276_s25, 4  ;;  %s83_s28 = sshll.u32 %s2277_s27, 4  ;;  %s72_s26 = int_to_ptr.vmem [resolvable:$true] %s71_s26  ;;  %s84_s28 = int_to_ptr.vmem [resolvable:$true] %s83_s28 }
  0x2f   :  { %s2208_s0 = scalar_lea.vmem %s72_s26, 3072  ;;  %p2213_p7 = scmp.lt.s32.totalorder %s72_s26, %s72_s26 }
  0x30   :  { %p2209_p6 = scmp.ne.s32.totalorder %s72_s26, %s2208_s0  ;;  %p2214_p8 = scmp.lt.s32.totalorder %s2208_s0, %s2208_s0 }
  0x32   :  { %p2215_p9 = por %p2214_p8, %p2213_p7 }
  0x34   :  { %p2216_p10 = pnand %p2215_p9, %p2209_p6 }
  0x36   :  { %2219 = shalt.err (!%p2216_p10)
}
  0x37   :  { %77 = dma.hbm_to_vmem [thread:$0]  %s2459_s4, 3072, %s72_s26, [#allocation9], %s2272_s10, %s2272_s10, %s2273_s11  }
  0x38   :  { %s2228_s2 = scalar_lea.vmem %s84_s28, 1024  ;;  %p2233_p12 = scmp.lt.s32.totalorder %s84_s28, %s84_s28 }
  0x39   :  { %p2229_p11 = scmp.ne.s32.totalorder %s84_s28, %s2228_s2  ;;  %p2234_p13 = scmp.lt.s32.totalorder %s2228_s2, %s2228_s2 }
  0x3b   :  { %p2235_p0 = por %p2234_p13, %p2233_p12 }
  0x3d   :  { %p2236_p1 = pnand %p2235_p0, %p2229_p11 }
  0x3f   :  { %2239 = shalt.err (!%p2236_p1)
}
  0x40   :  { %89 = dma.hbm_to_vmem [thread:$0]  %s2460_s5, 1024, %s84_s28, [#allocation12], %s2272_s10, %s2272_s10, %s2273_s11  }
  0x41   :  { %2260 = dma.done.wait [#allocation3], 1024  }
  0x42   :  { %2261 = vsyncadd [#allocation3], 4294966272 }
  0x43   :  { %2262 = dma.done.wait [#allocation6], 2048  }
  0x44   :  { %2263 = vsyncadd [#allocation6], 4294965248 }
  0x45   :  { %2264 = dma.done.wait [#allocation9], 4096  }
  0x46   :  { %2265 = vsyncadd [#allocation9], 4294963200 }
  0x47   :  { %2266 = dma.done.wait [#allocation12], 1024  }
  0x48   :  { %2267 = vsyncadd [#allocation12], 4294966272  ;;  %v2056_v0 = vld [vmem:[#allocation5 + $0x38] sm:$0xff]   ;;  %v2057_v1 = vld [vmem:[#allocation5 + $0x30] sm:$0xff]   ;;  %vm2279_vm0 = vmmov 0  }
  0x49   :  { %1761 = vmatprep.subr.bf16.mxu0 %v2056_v0  ;;  %v2058_v2 = vld [vmem:[#allocation5 + $0x28] sm:$0xff]   ;;  %v2059_v3 = vld [vmem:[#allocation5 + $0x20] sm:$0xff]   ;;  %v2060_v5 = vld [vmem:[#allocation5 + $0x18] sm:$0xff]  }
  0x4a   :  { %1762 = vmatpush3.bf16.msra.mxu0 %v2056_v0  ;;  %v2064_v4 = vld [vmem:[#allocation2] sm:$0xff]   ;;  %v2061_v6 = vld [vmem:[#allocation5 + $0x10] sm:$0xff]   ;;  %v2072_v7 = vld [vmem:[#allocation8 + $0x38] sm:$0xff]  }
  0x4b   :  { %1763 = vmatprep.subr.bf16.mxu0 %v2057_v1  ;;  %1777 = vmatprep.mubr.bf16.mxu0 %v2064_v4  ;;  %v2073_v8 = vld [vmem:[#allocation8 + $0x30] sm:$0xff]   ;;  %v2062_v9 = vld [vmem:[#allocation5 + $0x8] sm:$0xff]   ;;  %v2063_v11 = vld [vmem:[#allocation5] sm:$0xff]  }
  0x4c   :  { %1793 = vmatprep.subr.bf16.mxu1 %v2072_v7  ;;  %v2074_v10 = vld [vmem:[#allocation8 + $0x28] sm:$0xff]   ;;  %v2075_v12 = vld [vmem:[#allocation8 + $0x20] sm:$0xff]   ;;  %v2076_v13 = vld [vmem:[#allocation8 + $0x18] sm:$0xff]  }
  0x4d   :  { %1794 = vmatpush3.bf16.msra.mxu1 %v2072_v7  ;;  %v2065_v14 = vld [vmem:[#allocation2 + $0x8] sm:$0xff]   ;;  %v2066_v15 = vld [vmem:[#allocation2 + $0x10] sm:$0xff]   ;;  %v2067_v17 = vld [vmem:[#allocation2 + $0x18] sm:$0xff]  }
  0x4e   :  { %1764 = vmatpush3.bf16.msra.mxu0 %v2057_v1  ;;  %1795 = vmatprep.subr.bf16.mxu1 %v2073_v8  ;;  %v2077_v16 = vld [vmem:[#allocation8 + $0x10] sm:$0xff]   ;;  %v2068_v18 = vld [vmem:[#allocation2 + $0x20] sm:$0xff]   ;;  %v2069_v19 = vld [vmem:[#allocation2 + $0x28] sm:$0xff]  }
  0x4f   :  { %1765 = vmatprep.subr.bf16.mxu0 %v2058_v2  ;;  %v2070_v20 = vld [vmem:[#allocation2 + $0x30] sm:$0xff]   ;;  %v2071_v21 = vld [vmem:[#allocation2 + $0x38] sm:$0xff]   ;;  %v2078_v22 = vld [vmem:[#allocation8 + $0x8] sm:$0xff]  }
  0x50   :  { %v2079_v23 = vld [vmem:[#allocation8] sm:$0xff]   ;;  %v2088_v49 = vld [vmem:[#allocation10 + $0x38] sm:$0xff]   ;;  %v2089_v50 = vld [vmem:[#allocation10 + $0x30] sm:$0xff]  }
  0x51   :  { %1796 = vmatpush3.bf16.msra.mxu1 %v2073_v8  ;;  %v2362_v48 = vld [vmem:[#allocation7] sm:$0xff]   ;;  %v2090_v51 = vld [vmem:[#allocation10 + $0x28] sm:$0xff]   ;;  %v2092_v53 = vld [vmem:[#allocation10 + $0x18] sm:$0xff]  }
  0x52   :  { %1766 = vmatpush3.bf16.msra.mxu0 %v2058_v2  ;;  %1797 = vmatprep.subr.bf16.mxu1 %v2074_v10  ;;  %v2091_v52 = vld [vmem:[#allocation10 + $0x20] sm:$0xff]  }
  0x53   :  { %1767 = vmatprep.subr.bf16.mxu0 %v2059_v3 }
  0x55   :  { %1798 = vmatpush3.bf16.msra.mxu1 %v2074_v10 }
  0x56   :  { %1768 = vmatpush3.bf16.msra.mxu0 %v2059_v3  ;;  %1799 = vmatprep.subr.bf16.mxu1 %v2075_v12 }
  0x57   :  { %1769 = vmatprep.subr.bf16.mxu0 %v2060_v5 }
  0x59   :  { %1800 = vmatpush3.bf16.msra.mxu1 %v2075_v12 }
  0x5a   :  { %1770 = vmatpush3.bf16.msra.mxu0 %v2060_v5  ;;  %1801 = vmatprep.subr.bf16.mxu1 %v2076_v13 }
  0x5b   :  { %1771 = vmatprep.subr.bf16.mxu0 %v2061_v6 }
  0x5d   :  { %1802 = vmatpush3.bf16.msra.mxu1 %v2076_v13 }
  0x5e   :  { %1772 = vmatpush3.bf16.msra.mxu0 %v2061_v6  ;;  %1803 = vmatprep.subr.bf16.mxu1 %v2077_v16 }
  0x5f   :  { %1773 = vmatprep.subr.bf16.mxu0 %v2062_v9 }
  0x61   :  { %1804 = vmatpush3.bf16.msra.mxu1 %v2077_v16  ;;  %v2371_v16 = vld [vmem:[#allocation7 + $0x18] sm:$0xff]  }
  0x62   :  { %1774 = vmatpush3.bf16.msra.mxu0 %v2062_v9  ;;  %1805 = vmatprep.subr.bf16.mxu1 %v2078_v22 }
  0x63   :  { %1775 = vmatprep.subr.bf16.mxu0 %v2063_v11 }
  0x65   :  { %1806 = vmatpush3.bf16.msra.mxu1 %v2078_v22  ;;  %v2094_v22 = vld [vmem:[#allocation10 + $0x8] sm:$0xff]  }
  0x66   :  { %1776 = vmatpush3.bf16.msra.mxu0 %v2063_v11  ;;  %1807 = vmatprep.subr.bf16.mxu1 %v2079_v23 }
  0x69   :  { %1778 = vmatmul.mubr.bf16.vlgmr.msra.gmra.mxu0 %v2065_v14  ;;  %1808 = vmatpush3.bf16.msra.mxu1 %v2079_v23  ;;  %v2365_v14 = vld [vmem:[#allocation7 + $0x8] sm:$0xff]   ;;  %v2095_v23 = vld [vmem:[#allocation10] sm:$0xff]  }
  0x6a   :  { %1781 = vmatprep.mubr.bf16.mxu0 %v2066_v15  ;;  %1857 = vmatprep.subr.bf16.mxu1 %v2088_v49  ;;  %v2367_v15 = vld [vmem:[#allocation7 + $0x10] sm:$0xff]  }
  0x71   :  { %1782 = vmatmul.mubr.bf16.gmra.mxu0 %v2067_v17  ;;  %v2373_v17 = vld [vmem:[#allocation7 + $0x20] sm:$0xff]  }
  0x72   :  { %1785 = vmatprep.mubr.bf16.mxu0 %v2068_v18  ;;  %v2377_v18 = vld [vmem:[#allocation7 + $0x28] sm:$0xff]  }
  0x79   :  { %1786 = vmatmul.mubr.bf16.gmra.mxu0 %v2069_v19  ;;  %v2379_v19 = vld [vmem:[#allocation7 + $0x30] sm:$0xff]  }
  0x7a   :  { %1789 = vmatprep.mubr.bf16.mxu0 %v2070_v20  ;;  %v2383_v20 = vld [vmem:[#allocation7 + $0x38] sm:$0xff]  }
  0x81   :  { %1790 = vmatmul.mubr.bf16.gmra.mxu0 %v2071_v21  ;;  %v2093_v21 = vld [vmem:[#allocation10 + $0x10] sm:$0xff]  }
  0x82   :  { %1841 = vmatprep.mubr.bf16.mxu0 %v2362_v48 }
 0x129   :  { %v1779_v24 = vpop.f32.mrf.mxu0 }
 0x12b   :  { %v292_v25 = vpop.f32.mrf.mxu0 }
 0x12d   :  { %v1780_v26 = vpop.f32.mrf.mxu0 }
 0x12e   :  { %v356_v29 = vpack.c.bf16 %v1780_v26, %v1779_v24  ;;  %v532_v24 = vlaneseq }
 0x12f   :  { %v295_v27 = vpop.f32.mrf.mxu0 }
 0x130   :  { %v355_v28 = vpack.c.bf16 %v295_v27, %v292_v25  ;;  %v2387_v25 = vshrl.u32 %v532_v24, 7  ;;  %v2393_v27 = vld [vmem:[%s2461_s6] sm:$0xff] }
 0x131   :  { %v1783_v30 = vpop.f32.mrf.mxu0 }
 0x132   :  { %1809 = vmatprep.mubr.bf16.mxu1 %v355_v28  ;;  %v534_v26 = vsub.s32 0, %v2387_v25 }
 0x133   :  { %v308_v31 = vpop.f32.mrf.mxu0  ;;  %1810 = vmatmul.mubr.bf16.vlgmr.msra.gmra.mxu1 %v356_v29 }
 0x134   :  { %1858 = vmatpush3.bf16.msra.mxu1 %v2088_v49  ;;  %v535_v29 = vrot.slane %v2393_v27, %v534_v26 }
 0x135   :  { %v1784_v32 = vpop.f32.mrf.mxu0  ;;  %1859 = vmatprep.subr.bf16.mxu1 %v2089_v50 }
 0x136   :  { %v358_v35 = vpack.c.bf16 %v1784_v32, %v1783_v30 }
 0x137   :  { %v311_v33 = vpop.f32.mrf.mxu0 }
 0x138   :  { %v357_v34 = vpack.c.bf16 %v311_v33, %v308_v31  ;;  %1860 = vmatpush3.bf16.msra.mxu1 %v2089_v50 }
 0x139   :  { %v1787_v36 = vpop.f32.mrf.mxu0  ;;  %1861 = vmatprep.subr.bf16.mxu1 %v2090_v51 }
 0x13a   :  { %1813 = vmatprep.mubr.bf16.mxu1 %v357_v34 }
 0x13b   :  { %v324_v37 = vpop.f32.mrf.mxu0  ;;  %1814 = vmatmul.mubr.bf16.gmra.mxu1 %v358_v35 }
 0x13c   :  { %1862 = vmatpush3.bf16.msra.mxu1 %v2090_v51 }
 0x13d   :  { %v1788_v38 = vpop.f32.mrf.mxu0  ;;  %1863 = vmatprep.subr.bf16.mxu1 %v2091_v52 }
 0x13e   :  { %v360_v41 = vpack.c.bf16 %v1788_v38, %v1787_v36 }
 0x13f   :  { %v327_v39 = vpop.f32.mrf.mxu0 }
 0x140   :  { %v359_v40 = vpack.c.bf16 %v327_v39, %v324_v37  ;;  %1864 = vmatpush3.bf16.msra.mxu1 %v2091_v52 }
 0x141   :  { %v1791_v42 = vpop.f32.mrf.mxu0  ;;  %1865 = vmatprep.subr.bf16.mxu1 %v2092_v53 }
 0x142   :  { %1817 = vmatprep.mubr.bf16.mxu1 %v359_v40 }
 0x143   :  { %v340_v43 = vpop.f32.mrf.mxu0  ;;  %1818 = vmatmul.mubr.bf16.gmra.mxu1 %v360_v41 }
 0x144   :  { %1866 = vmatpush3.bf16.msra.mxu1 %v2092_v53 }
 0x145   :  { %v1792_v44 = vpop.f32.mrf.mxu0  ;;  %1867 = vmatprep.subr.bf16.mxu1 %v2093_v21 }
 0x146   :  { %v362_v47 = vpack.c.bf16 %v1792_v44, %v1791_v42 }
 0x147   :  { %v343_v45 = vpop.f32.mrf.mxu0 }
 0x148   :  { %v361_v46 = vpack.c.bf16 %v343_v45, %v340_v43  ;;  %1868 = vmatpush3.bf16.msra.mxu1 %v2093_v21 }
 0x149   :  { %1869 = vmatprep.subr.bf16.mxu1 %v2094_v22 }
 0x14a   :  { %1821 = vmatprep.mubr.bf16.mxu1 %v361_v46 }
 0x14b   :  { %1822 = vmatmul.mubr.bf16.gmra.mxu1 %v362_v47 }
 0x14c   :  { %1870 = vmatpush3.bf16.msra.mxu1 %v2094_v22 }
 0x14d   :  { %1871 = vmatprep.subr.bf16.mxu1 %v2095_v23 }
 0x150   :  { %1872 = vmatpush3.bf16.msra.mxu1 %v2095_v23 }
 0x1f3   :  { %v1811_v54 = vpop.f32.mrf.mxu1 }
 0x1f5   :  { %v461_v55 = vpop.f32.mrf.mxu1 }
 0x1f7   :  { %v1812_v56 = vpop.f32.mrf.mxu1 }
 0x1f8   :  { %v525_v12 = vpack.c.bf16 %v1812_v56, %v1811_v54 }
 0x1f9   :  { %v464_v57 = vpop.f32.mrf.mxu1 }
 0x1fa   :  { %v524_v13 = vpack.c.bf16 %v464_v57, %v461_v55 }
 0x1fb   :  { %v1815_v58 = vpop.f32.mrf.mxu1 }
 0x1fd   :  { %v477_v59 = vpop.f32.mrf.mxu1 }
 0x1ff   :  { %v1816_v60 = vpop.f32.mrf.mxu1 }
 0x200   :  { %v527_v10 = vpack.c.bf16 %v1816_v60, %v1815_v58 }
 0x201   :  { %v480_v61 = vpop.f32.mrf.mxu1 }
 0x202   :  { %v526_v11 = vpack.c.bf16 %v480_v61, %v477_v59 }
 0x203   :  { %v1819_v62 = vpop.f32.mrf.mxu1 }
 0x205   :  { %v493_v63 = vpop.f32.mrf.mxu1 }
 0x207   :  { %v1820_v0 = vpop.f32.mrf.mxu1 }
 0x208   :  { %v529_v8 = vpack.c.bf16 %v1820_v0, %v1819_v62 }
 0x209   :  { %v496_v1 = vpop.f32.mrf.mxu1 }
 0x20a   :  { %v528_v9 = vpack.c.bf16 %v496_v1, %v493_v63 }
 0x20b   :  { %v1823_v2 = vpop.f32.mrf.mxu1 }
 0x20d   :  { %v509_v3 = vpop.f32.mrf.mxu1 }
 0x20f   :  { %v1824_v4 = vpop.f32.mrf.mxu1 }
 0x210   :  { %v531_v5 = vpack.c.bf16 %v1824_v4, %v1823_v2 }
 0x211   :  { %v512_v6 = vpop.f32.mrf.mxu1 }
 0x212   :  { %v530_v7 = vpack.c.bf16 %v512_v6, %v509_v3  ;;  %1825 = vmatprep.subr.bf16.mxu0 %v531_v5 }
 0x213   :  { %1826 = vmatpush3.bf16.msra.mxu0 %v531_v5 }
 0x214   :  { %1827 = vmatprep.subr.bf16.mxu0 %v530_v7 }
 0x217   :  { %1828 = vmatpush3.bf16.msra.mxu0 %v530_v7 }
 0x218   :  { %1829 = vmatprep.subr.bf16.mxu0 %v529_v8 }
 0x21b   :  { %1830 = vmatpush3.bf16.msra.mxu0 %v529_v8 }
 0x21c   :  { %1831 = vmatprep.subr.bf16.mxu0 %v528_v9 }
 0x21f   :  { %1832 = vmatpush3.bf16.msra.mxu0 %v528_v9 }
 0x220   :  { %1833 = vmatprep.subr.bf16.mxu0 %v527_v10 }
 0x223   :  { %1834 = vmatpush3.bf16.msra.mxu0 %v527_v10 }
 0x224   :  { %1835 = vmatprep.subr.bf16.mxu0 %v526_v11 }
 0x227   :  { %1836 = vmatpush3.bf16.msra.mxu0 %v526_v11 }
 0x228   :  { %1837 = vmatprep.subr.bf16.mxu0 %v525_v12 }
 0x22b   :  { %1838 = vmatpush3.bf16.msra.mxu0 %v525_v12 }
 0x22c   :  { %1839 = vmatprep.subr.bf16.mxu0 %v524_v13 }
 0x22f   :  { %1840 = vmatpush3.bf16.msra.mxu0 %v524_v13 }
 0x232   :  { %1842 = vmatmul.mubr.bf16.vlgmr.msra.gmra.mxu0 %v2365_v14 }
 0x233   :  { %1845 = vmatprep.mubr.bf16.mxu0 %v2367_v15 }
 0x23a   :  { %1846 = vmatmul.mubr.bf16.gmra.mxu0 %v2371_v16 }
 0x23b   :  { %1849 = vmatprep.mubr.bf16.mxu0 %v2373_v17 }
 0x242   :  { %1850 = vmatmul.mubr.bf16.gmra.mxu0 %v2377_v18 }
 0x243   :  { %1853 = vmatprep.mubr.bf16.mxu0 %v2379_v19 }
 0x24a   :  { %1854 = vmatmul.mubr.bf16.gmra.mxu0 %v2383_v20 }
 0x24b   :  { %1905 = vmatprep.mubr.bf16.mxu0 %v2362_v48 }
 0x2f2   :  { %v1843_v28 = vpop.f32.mrf.mxu0 }
 0x2f3   :  { %v627_v34 = vadd.f32 %v1843_v28, %v535_v29 }
 0x2f4   :  { %v618_v30 = vpop.f32.mrf.mxu0 }
 0x2f5   :  { %v619_v32 = vadd.f32 %v618_v30, %v535_v29  ;;  %v683_v41 = vmax.f32 %v627_v34, 0.0  ;;  %v2098_v34 = vld [vmem:[#allocation10 + $0x68] sm:$0xff]  }
 0x2f6   :  { %v1844_v31 = vpop.f32.mrf.mxu0 }
 0x2f7   :  { %v630_v33 = vadd.f32 %v1844_v31, %v535_v29  ;;  %v681_v39 = vmax.f32 %v619_v32, 0.0  ;;  %v2096_v32 = vld [vmem:[#allocation10 + $0x78] sm:$0xff]  }
 0x2f8   :  { %v621_v35 = vpop.f32.mrf.mxu0  ;;  %1921 = vmatprep.subr.bf16.mxu1 %v2096_v32 }
 0x2f9   :  { %v622_v36 = vadd.f32 %v621_v35, %v535_v29  ;;  %v684_v37 = vmax.f32 %v630_v33, 0.0  ;;  %v2097_v33 = vld [vmem:[#allocation10 + $0x70] sm:$0xff]   ;;  %v2099_v35 = vld [vmem:[#allocation10 + $0x60] sm:$0xff]  }
 0x2fa   :  { %v1847_v38 = vpop.f32.mrf.mxu0 }
 0x2fb   :  { %v682_v40 = vmax.f32 %v622_v36, 0.0  ;;  %v698_v44 = vpack.c.bf16 %v684_v37, %v683_v41  ;;  %v643_v49 = vadd.f32 %v1847_v38, %v535_v29 }
 0x2fc   :  { %v634_v42 = vpop.f32.mrf.mxu0 }
 0x2fd   :  { %v697_v43 = vpack.c.bf16 %v682_v40, %v681_v39  ;;  %v635_v46 = vadd.f32 %v634_v42, %v535_v29  ;;  %v687_v56 = vmax.f32 %v643_v49, 0.0 }
 0x2fe   :  { %v1848_v45 = vpop.f32.mrf.mxu0 }
 0x2ff   :  { %v646_v47 = vadd.f32 %v1848_v45, %v535_v29  ;;  %1873 = vmatprep.mubr.bf16.mxu1 %v697_v43  ;;  %v685_v54 = vmax.f32 %v635_v46, 0.0 }
 0x300   :  { %v637_v50 = vpop.f32.mrf.mxu0  ;;  %1874 = vmatmul.mubr.bf16.vlgmr.msra.gmra.mxu1 %v698_v44 }
 0x301   :  { %v638_v51 = vadd.f32 %v637_v50, %v535_v29  ;;  %v688_v52 = vmax.f32 %v646_v47, 0.0  ;;  %1922 = vmatpush3.bf16.msra.mxu1 %v2096_v32 }
 0x302   :  { %v1851_v53 = vpop.f32.mrf.mxu0  ;;  %1923 = vmatprep.subr.bf16.mxu1 %v2097_v33 }
 0x303   :  { %v686_v55 = vmax.f32 %v638_v51, 0.0  ;;  %v700_v59 = vpack.c.bf16 %v688_v52, %v687_v56  ;;  %v659_v63 = vadd.f32 %v1851_v53, %v535_v29 }
 0x304   :  { %v650_v57 = vpop.f32.mrf.mxu0 }
 0x305   :  { %v699_v58 = vpack.c.bf16 %v686_v55, %v685_v54  ;;  %v651_v61 = vadd.f32 %v650_v57, %v535_v29  ;;  %v691_v6 = vmax.f32 %v659_v63, 0.0  ;;  %1924 = vmatpush3.bf16.msra.mxu1 %v2097_v33  ;;  %v2103_v63 = vld [vmem:[#allocation10 + $0x40] sm:$0xff]  }
 0x306   :  { %v1852_v60 = vpop.f32.mrf.mxu0  ;;  %1925 = vmatprep.subr.bf16.mxu1 %v2098_v34 }
 0x307   :  { %v662_v62 = vadd.f32 %v1852_v60, %v535_v29  ;;  %1877 = vmatprep.mubr.bf16.mxu1 %v699_v58  ;;  %v689_v4 = vmax.f32 %v651_v61, 0.0  ;;  %v2101_v61 = vld [vmem:[#allocation10 + $0x50] sm:$0xff]  }
 0x308   :  { %v653_v0 = vpop.f32.mrf.mxu0  ;;  %1878 = vmatmul.mubr.bf16.gmra.mxu1 %v700_v59 }
 0x309   :  { %v654_v1 = vadd.f32 %v653_v0, %v535_v29  ;;  %v692_v2 = vmax.f32 %v662_v62, 0.0  ;;  %1926 = vmatpush3.bf16.msra.mxu1 %v2098_v34  ;;  %v2102_v62 = vld [vmem:[#allocation10 + $0x48] sm:$0xff]   ;;  %v876_v0 = vsub.s32 1, %v2387_v25 }
 0x30a   :  { %v1855_v3 = vpop.f32.mrf.mxu0  ;;  %1927 = vmatprep.subr.bf16.mxu1 %v2099_v35 }
 0x30b   :  { %v690_v5 = vmax.f32 %v654_v1, 0.0  ;;  %v702_v9 = vpack.c.bf16 %v692_v2, %v691_v6  ;;  %v675_v13 = vadd.f32 %v1855_v3, %v535_v29  ;;  %v877_v2 = vrot.slane %v2393_v27, %v876_v0 }
 0x30c   :  { %v666_v7 = vpop.f32.mrf.mxu0 }
 0x30d   :  { %v701_v8 = vpack.c.bf16 %v690_v5, %v689_v4  ;;  %v667_v11 = vadd.f32 %v666_v7, %v535_v29  ;;  %v695_v28 = vmax.f32 %v675_v13, 0.0  ;;  %1928 = vmatpush3.bf16.msra.mxu1 %v2099_v35 }
 0x30e   :  { %v1856_v10 = vpop.f32.mrf.mxu0 }
 0x30f   :  { %v678_v12 = vadd.f32 %v1856_v10, %v535_v29  ;;  %1881 = vmatprep.mubr.bf16.mxu1 %v701_v8  ;;  %v693_v24 = vmax.f32 %v667_v11, 0.0 }
 0x310   :  { %v669_v21 = vpop.f32.mrf.mxu0  ;;  %1882 = vmatmul.mubr.bf16.gmra.mxu1 %v702_v9 }
 0x311   :  { %v670_v22 = vadd.f32 %v669_v21, %v535_v29  ;;  %v696_v23 = vmax.f32 %v678_v12, 0.0  ;;  %v2100_v29 = vld [vmem:[#allocation10 + $0x58] sm:$0xff]  }
 0x312   :  { %1929 = vmatprep.subr.bf16.mxu1 %v2100_v29 }
 0x313   :  { %v694_v26 = vmax.f32 %v670_v22, 0.0  ;;  %v704_v31 = vpack.c.bf16 %v696_v23, %v695_v28  ;;  %1930 = vmatpush3.bf16.msra.mxu1 %v2100_v29 }
 0x314   :  { %1931 = vmatprep.subr.bf16.mxu1 %v2101_v61 }
 0x315   :  { %v703_v30 = vpack.c.bf16 %v694_v26, %v693_v24 }
 0x317   :  { %1885 = vmatprep.mubr.bf16.mxu1 %v703_v30  ;;  %1932 = vmatpush3.bf16.msra.mxu1 %v2101_v61 }
 0x318   :  { %1886 = vmatmul.mubr.bf16.gmra.mxu1 %v704_v31  ;;  %1933 = vmatprep.subr.bf16.mxu1 %v2102_v62 }
 0x31b   :  { %1934 = vmatpush3.bf16.msra.mxu1 %v2102_v62 }
 0x31c   :  { %1935 = vmatprep.subr.bf16.mxu1 %v2103_v63 }
 0x31f   :  { %1936 = vmatpush3.bf16.msra.mxu1 %v2103_v63 }
 0x3c0   :  { %v1875_v36 = vpop.f32.mrf.mxu1 }
 0x3c2   :  { %v803_v37 = vpop.f32.mrf.mxu1 }
 0x3c4   :  { %v1876_v38 = vpop.f32.mrf.mxu1 }
 0x3c5   :  { %v867_v59 = vpack.c.bf16 %v1876_v38, %v1875_v36 }
 0x3c6   :  { %v806_v39 = vpop.f32.mrf.mxu1 }
 0x3c7   :  { %v866_v60 = vpack.c.bf16 %v806_v39, %v803_v37 }
 0x3c8   :  { %v1879_v40 = vpop.f32.mrf.mxu1 }
 0x3ca   :  { %v819_v41 = vpop.f32.mrf.mxu1 }
 0x3cc   :  { %v1880_v42 = vpop.f32.mrf.mxu1 }
 0x3cd   :  { %v869_v57 = vpack.c.bf16 %v1880_v42, %v1879_v40 }
 0x3ce   :  { %v822_v43 = vpop.f32.mrf.mxu1 }
 0x3cf   :  { %v868_v58 = vpack.c.bf16 %v822_v43, %v819_v41 }
 0x3d0   :  { %v1883_v44 = vpop.f32.mrf.mxu1 }
 0x3d2   :  { %v835_v45 = vpop.f32.mrf.mxu1 }
 0x3d4   :  { %v1884_v46 = vpop.f32.mrf.mxu1 }
 0x3d5   :  { %v871_v55 = vpack.c.bf16 %v1884_v46, %v1883_v44 }
 0x3d6   :  { %v838_v47 = vpop.f32.mrf.mxu1 }
 0x3d7   :  { %v870_v56 = vpack.c.bf16 %v838_v47, %v835_v45 }
 0x3d8   :  { %v1887_v49 = vpop.f32.mrf.mxu1 }
 0x3da   :  { %v851_v50 = vpop.f32.mrf.mxu1 }
 0x3dc   :  { %v1888_v51 = vpop.f32.mrf.mxu1 }
 0x3dd   :  { %v873_v52 = vpack.c.bf16 %v1888_v51, %v1887_v49 }
 0x3de   :  { %v854_v53 = vpop.f32.mrf.mxu1 }
 0x3df   :  { %v872_v54 = vpack.c.bf16 %v854_v53, %v851_v50  ;;  %1889 = vmatprep.subr.bf16.mxu0 %v873_v52 }
 0x3e0   :  { %1890 = vmatpush3.bf16.msra.mxu0 %v873_v52 }
 0x3e1   :  { %1891 = vmatprep.subr.bf16.mxu0 %v872_v54 }
 0x3e4   :  { %1892 = vmatpush3.bf16.msra.mxu0 %v872_v54 }
 0x3e5   :  { %1893 = vmatprep.subr.bf16.mxu0 %v871_v55 }
 0x3e8   :  { %1894 = vmatpush3.bf16.msra.mxu0 %v871_v55 }
 0x3e9   :  { %1895 = vmatprep.subr.bf16.mxu0 %v870_v56 }
 0x3ec   :  { %1896 = vmatpush3.bf16.msra.mxu0 %v870_v56 }
 0x3ed   :  { %1897 = vmatprep.subr.bf16.mxu0 %v869_v57 }
 0x3f0   :  { %1898 = vmatpush3.bf16.msra.mxu0 %v869_v57 }
 0x3f1   :  { %1899 = vmatprep.subr.bf16.mxu0 %v868_v58 }
 0x3f4   :  { %1900 = vmatpush3.bf16.msra.mxu0 %v868_v58 }
 0x3f5   :  { %1901 = vmatprep.subr.bf16.mxu0 %v867_v59 }
 0x3f8   :  { %1902 = vmatpush3.bf16.msra.mxu0 %v867_v59 }
 0x3f9   :  { %1903 = vmatprep.subr.bf16.mxu0 %v866_v60 }
 0x3fc   :  { %1904 = vmatpush3.bf16.msra.mxu0 %v866_v60 }
 0x3ff   :  { %1906 = vmatmul.mubr.bf16.vlgmr.msra.gmra.mxu0 %v2365_v14 }
 0x400   :  { %1909 = vmatprep.mubr.bf16.mxu0 %v2367_v15 }
 0x407   :  { %1910 = vmatmul.mubr.bf16.gmra.mxu0 %v2371_v16 }
 0x408   :  { %1913 = vmatprep.mubr.bf16.mxu0 %v2373_v17 }
 0x40f   :  { %1914 = vmatmul.mubr.bf16.gmra.mxu0 %v2377_v18 }
 0x410   :  { %1917 = vmatprep.mubr.bf16.mxu0 %v2379_v19 }
 0x417   :  { %1918 = vmatmul.mubr.bf16.gmra.mxu0 %v2383_v20 }
 0x418   :  { %1969 = vmatprep.mubr.bf16.mxu0 %v2362_v48 }
 0x4bf   :  { %v1907_v1 = vpop.f32.mrf.mxu0 }
 0x4c0   :  { %v921_v7 = vadd.f32 %v1907_v1, %v877_v2 }
 0x4c1   :  { %v912_v3 = vpop.f32.mrf.mxu0 }
 0x4c2   :  { %v913_v5 = vadd.f32 %v912_v3, %v877_v2  ;;  %v977_v13 = vmax.f32 %v921_v7, 0.0 }
 0x4c3   :  { %v1908_v4 = vpop.f32.mrf.mxu0 }
 0x4c4   :  { %v924_v6 = vadd.f32 %v1908_v4, %v877_v2  ;;  %v975_v11 = vmax.f32 %v913_v5, 0.0 }
 0x4c5   :  { %v915_v48 = vpop.f32.mrf.mxu0 }
 0x4c6   :  { %v916_v8 = vadd.f32 %v915_v48, %v877_v2  ;;  %v978_v9 = vmax.f32 %v924_v6, 0.0 }
 0x4c7   :  { %v1911_v10 = vpop.f32.mrf.mxu0 }
 0x4c8   :  { %v976_v12 = vmax.f32 %v916_v8, 0.0  ;;  %v992_v23 = vpack.c.bf16 %v978_v9, %v977_v13  ;;  %v937_v30 = vadd.f32 %v1911_v10, %v877_v2 }
 0x4c9   :  { %v928_v21 = vpop.f32.mrf.mxu0 }
 0x4ca   :  { %v991_v22 = vpack.c.bf16 %v976_v12, %v975_v11  ;;  %v929_v26 = vadd.f32 %v928_v21, %v877_v2  ;;  %v981_v36 = vmax.f32 %v937_v30, 0.0 }
 0x4cb   :  { %v1912_v24 = vpop.f32.mrf.mxu0 }
 0x4cc   :  { %v940_v28 = vadd.f32 %v1912_v24, %v877_v2  ;;  %1937 = vmatprep.mubr.bf16.mxu1 %v991_v22  ;;  %v979_v35 = vmax.f32 %v929_v26, 0.0 }
 0x4cd   :  { %v931_v31 = vpop.f32.mrf.mxu0  ;;  %1938 = vmatmul.mubr.bf16.vlgmr.msra.gmra.mxu1 %v992_v23 }
 0x4ce   :  { %v932_v32 = vadd.f32 %v931_v31, %v877_v2  ;;  %v982_v33 = vmax.f32 %v940_v28, 0.0 }
 0x4cf   :  { %v1915_v34 = vpop.f32.mrf.mxu0 }
 0x4d0   :  { %v980_v29 = vmax.f32 %v932_v32, 0.0  ;;  %v994_v39 = vpack.c.bf16 %v982_v33, %v981_v36  ;;  %v953_v43 = vadd.f32 %v1915_v34, %v877_v2 }
 0x4d1   :  { %v944_v37 = vpop.f32.mrf.mxu0 }
 0x4d2   :  { %v993_v38 = vpack.c.bf16 %v980_v29, %v979_v35  ;;  %v945_v41 = vadd.f32 %v944_v37, %v877_v2  ;;  %v985_v51 = vmax.f32 %v953_v43, 0.0  ;;  %v2278_v29 = vmov 0.0  }
 0x4d3   :  { %v1916_v40 = vpop.f32.mrf.mxu0  ;;  %1985 = vmatprep.subr.bf16.mxu1 %v2278_v29 }
 0x4d4   :  { %v956_v42 = vadd.f32 %v1916_v40, %v877_v2  ;;  %1941 = vmatprep.mubr.bf16.mxu1 %v993_v38  ;;  %v983_v49 = vmax.f32 %v945_v41, 0.0 }
 0x4d5   :  { %v947_v44 = vpop.f32.mrf.mxu0  ;;  %1942 = vmatmul.mubr.bf16.gmra.mxu1 %v994_v39 }
 0x4d6   :  { %v948_v45 = vadd.f32 %v947_v44, %v877_v2  ;;  %v986_v46 = vmax.f32 %v956_v42, 0.0 }
 0x4d7   :  { %v1919_v47 = vpop.f32.mrf.mxu0 }
 0x4d8   :  { %v984_v50 = vmax.f32 %v948_v45, 0.0  ;;  %v996_v54 = vpack.c.bf16 %v986_v46, %v985_v51  ;;  %v969_v58 = vadd.f32 %v1919_v47, %v877_v2 }
 0x4d9   :  { %v960_v52 = vpop.f32.mrf.mxu0 }
 0x4da   :  { %v995_v53 = vpack.c.bf16 %v984_v50, %v983_v49  ;;  %v961_v56 = vadd.f32 %v960_v52, %v877_v2  ;;  %v989_v0 = vmax.f32 %v969_v58, 0.0  ;;  %v1171_v49 = vsub.s32 2, %v2387_v25 }
 0x4db   :  { %v1920_v55 = vpop.f32.mrf.mxu0 }
 0x4dc   :  { %v972_v57 = vadd.f32 %v1920_v55, %v877_v2  ;;  %1945 = vmatprep.mubr.bf16.mxu1 %v995_v53  ;;  %v987_v62 = vmax.f32 %v961_v56, 0.0  ;;  %v1172_v52 = vrot.slane %v2393_v27, %v1171_v49 }
 0x4dd   :  { %v963_v59 = vpop.f32.mrf.mxu0  ;;  %1946 = vmatmul.mubr.bf16.gmra.mxu1 %v996_v54 }
 0x4de   :  { %v964_v60 = vadd.f32 %v963_v59, %v877_v2  ;;  %v990_v61 = vmax.f32 %v972_v57, 0.0 }
 0x4e0   :  { %v988_v63 = vmax.f32 %v964_v60, 0.0  ;;  %v998_v3 = vpack.c.bf16 %v990_v61, %v989_v0 }
 0x4e2   :  { %v997_v1 = vpack.c.bf16 %v988_v63, %v987_v62 }
 0x4e4   :  { %1949 = vmatprep.mubr.bf16.mxu1 %v997_v1 }
 0x4e5   :  { %1950 = vmatmul.mubr.bf16.gmra.mxu1 %v998_v3 }
 0x4e6   :  { %2001 = vmatprep.mubr.msk.bf16.mxu1 %vm2279_vm0, %v2278_v29 }
 0x58d   :  { %v1939_v4 = vpop.f32.mrf.mxu1 }
 0x58f   :  { %v1098_v5 = vpop.f32.mrf.mxu1 }
 0x591   :  { %v1940_v6 = vpop.f32.mrf.mxu1 }
 0x592   :  { %v1162_v34 = vpack.c.bf16 %v1940_v6, %v1939_v4 }
 0x593   :  { %v1101_v7 = vpop.f32.mrf.mxu1 }
 0x594   :  { %v1161_v35 = vpack.c.bf16 %v1101_v7, %v1098_v5 }
 0x595   :  { %v1943_v48 = vpop.f32.mrf.mxu1 }
 0x597   :  { %v1114_v8 = vpop.f32.mrf.mxu1 }
 0x599   :  { %v1944_v9 = vpop.f32.mrf.mxu1 }
 0x59a   :  { %v1164_v32 = vpack.c.bf16 %v1944_v9, %v1943_v48 }
 0x59b   :  { %v1117_v10 = vpop.f32.mrf.mxu1 }
 0x59c   :  { %v1163_v33 = vpack.c.bf16 %v1117_v10, %v1114_v8 }
 0x59d   :  { %v1947_v11 = vpop.f32.mrf.mxu1 }
 0x59f   :  { %v1130_v12 = vpop.f32.mrf.mxu1 }
 0x5a1   :  { %v1948_v13 = vpop.f32.mrf.mxu1 }
 0x5a2   :  { %v1166_v30 = vpack.c.bf16 %v1948_v13, %v1947_v11 }
 0x5a3   :  { %v1133_v2 = vpop.f32.mrf.mxu1 }
 0x5a4   :  { %v1165_v31 = vpack.c.bf16 %v1133_v2, %v1130_v12 }
 0x5a5   :  { %v1951_v21 = vpop.f32.mrf.mxu1 }
 0x5a7   :  { %v1146_v22 = vpop.f32.mrf.mxu1 }
 0x5a9   :  { %v1952_v23 = vpop.f32.mrf.mxu1 }
 0x5aa   :  { %v1168_v24 = vpack.c.bf16 %v1952_v23, %v1951_v21  ;;  %v1270_v21 = vld [vmem:[%s2462_s7] sm:$0xf]  ;;  %v2112_v23 = vld [vmem:[#allocation11 + $0x38] sm:$0xff]   ;;  %s2280_s7 = smov [#allocation13]  }
 0x5ab   :  { %v1149_v26 = vpop.f32.mrf.mxu1  ;;  %s1546_s11 = sshll.u32 %s2280_s7, 4  ;;  %s1547_s11 = int_to_ptr.vmem [resolvable:$true] %s1546_s11 }
 0x5ac   :  { %v1167_v28 = vpack.c.bf16 %v1149_v26, %v1146_v22  ;;  %1953 = vmatprep.subr.bf16.mxu0 %v1168_v24  ;;  %v2111_v22 = vld [vmem:[#allocation10 + $0x80] sm:$0xff]   ;;  %v2114_v26 = vld [vmem:[#allocation11 + $0x28] sm:$0xff]   ;;  %s2240_s13 = scalar_lea.vmem %s1547_s11, 128  ;;  %p2245_p3 = scmp.lt.s32.totalorder %s1547_s11, %s1547_s11 }
 0x5ad   :  { %1954 = vmatpush3.bf16.msra.mxu0 %v1168_v24  ;;  %v2113_v24 = vld [vmem:[#allocation11 + $0x30] sm:$0xff]   ;;  %p2241_p2 = scmp.ne.s32.totalorder %s1547_s11, %s2240_s13  ;;  %p2246_p4 = scmp.lt.s32.totalorder %s2240_s13, %s2240_s13 }
 0x5ae   :  { %1955 = vmatprep.subr.bf16.mxu0 %v1167_v28 }
 0x5af   :  { %p2247_p5 = por %p2246_p4, %p2245_p3 }
 0x5b1   :  { %1956 = vmatpush3.bf16.msra.mxu0 %v1167_v28  ;;  %v2115_v28 = vld [vmem:[#allocation11 + $0x20] sm:$0xff]   ;;  %p2248_p6 = pnand %p2247_p5, %p2241_p2 }
 0x5b2   :  { %1957 = vmatprep.subr.bf16.mxu0 %v1166_v30 }
 0x5b5   :  { %1958 = vmatpush3.bf16.msra.mxu0 %v1166_v30  ;;  %v2116_v30 = vld [vmem:[#allocation11 + $0x18] sm:$0xff]  }
 0x5b6   :  { %1959 = vmatprep.subr.bf16.mxu0 %v1165_v31 }
 0x5b9   :  { %1960 = vmatpush3.bf16.msra.mxu0 %v1165_v31  ;;  %v2117_v31 = vld [vmem:[#allocation11 + $0x10] sm:$0xff]  }
 0x5ba   :  { %1961 = vmatprep.subr.bf16.mxu0 %v1164_v32 }
 0x5bd   :  { %1962 = vmatpush3.bf16.msra.mxu0 %v1164_v32 }
 0x5be   :  { %1963 = vmatprep.subr.bf16.mxu0 %v1163_v33 }
 0x5c1   :  { %1964 = vmatpush3.bf16.msra.mxu0 %v1163_v33 }
 0x5c2   :  { %1965 = vmatprep.subr.bf16.mxu0 %v1162_v34 }
 0x5c5   :  { %1966 = vmatpush3.bf16.msra.mxu0 %v1162_v34 }
 0x5c6   :  { %1967 = vmatprep.subr.bf16.mxu0 %v1161_v35 }
 0x5c9   :  { %1968 = vmatpush3.bf16.msra.mxu0 %v1161_v35 }
 0x5ca   :  { %2005 = vmatprep.subr.bf16.mxu0 %v2278_v29 }
 0x5cc   :  { %1970 = vmatmul.mubr.bf16.vlgmr.msra.gmra.mxu0 %v2365_v14  ;;  %v2104_v14 = vld [vmem:[#allocation10 + $0xb8] sm:$0xff]  }
 0x5cd   :  { %1973 = vmatprep.mubr.bf16.mxu0 %v2367_v15  ;;  %2006 = vmatpush3.bf16.msra.mxu0 %v2104_v14  ;;  %v2105_v15 = vld [vmem:[#allocation10 + $0xb0] sm:$0xff]  }
 0x5ce   :  { %2007 = vmatprep.subr.bf16.mxu0 %v2278_v29 }
 0x5d1   :  { %2008 = vmatpush3.bf16.msra.mxu0 %v2105_v15  ;;  %v2118_v15 = vld [vmem:[#allocation11 + $0x8] sm:$0xff]  }
 0x5d2   :  { %2009 = vmatprep.subr.bf16.mxu0 %v2278_v29 }
 0x5d4   :  { %1974 = vmatmul.mubr.bf16.gmra.mxu0 %v2371_v16  ;;  %v2106_v16 = vld [vmem:[#allocation10 + $0xa8] sm:$0xff]  }
 0x5d5   :  { %1977 = vmatprep.mubr.bf16.mxu0 %v2373_v17  ;;  %2010 = vmatpush3.bf16.msra.mxu0 %v2106_v16  ;;  %v2107_v17 = vld [vmem:[#allocation10 + $0xa0] sm:$0xff]  }
 0x5d6   :  { %2011 = vmatprep.subr.bf16.mxu0 %v2278_v29  ;;  %v2119_v16 = vld [vmem:[#allocation11] sm:$0xff]  }
 0x5d9   :  { %2012 = vmatpush3.bf16.msra.mxu0 %v2107_v17  ;;  %v1339_v17 = vsub.s32 3, %v2387_v25 }
 0x5da   :  { %2013 = vmatprep.subr.bf16.mxu0 %v2278_v29 }
 0x5dc   :  { %1978 = vmatmul.mubr.bf16.gmra.mxu0 %v2377_v18  ;;  %v2108_v18 = vld [vmem:[#allocation10 + $0x98] sm:$0xff]  }
 0x5dd   :  { %1981 = vmatprep.mubr.bf16.mxu0 %v2379_v19  ;;  %2014 = vmatpush3.bf16.msra.mxu0 %v2108_v18  ;;  %v2109_v19 = vld [vmem:[#allocation10 + $0x90] sm:$0xff]   ;;  %v1340_v18 = vrot.slane %v2393_v27, %v1339_v17 }
 0x5de   :  { %2015 = vmatprep.subr.bf16.mxu0 %v2278_v29 }
 0x5e1   :  { %2016 = vmatpush3.bf16.msra.mxu0 %v2109_v19 }
 0x5e2   :  { %2017 = vmatprep.subr.bf16.mxu0 %v2278_v29 }
 0x5e4   :  { %1982 = vmatmul.mubr.bf16.gmra.mxu0 %v2383_v20  ;;  %v2110_v20 = vld [vmem:[#allocation10 + $0x88] sm:$0xff]  }
 0x5e5   :  { %2021 = vmatprep.mubr.msk.bf16.mxu0 %vm2279_vm0, %v2278_v29  ;;  %2018 = vmatpush3.bf16.msra.mxu0 %v2110_v20 }
 0x5e6   :  { %2019 = vmatprep.subr.bf16.mxu0 %v2278_v29 }
 0x5e9   :  { %2020 = vmatpush3.bf16.msra.mxu0 %v2111_v22 }
 0x68c   :  { %v1971_v36 = vpop.f32.mrf.mxu0 }
 0x68d   :  { %v1216_v10 = vadd.f32 %v1971_v36, %v1172_v52 }
 0x68e   :  { %v1207_v37 = vpop.f32.mrf.mxu0 }
 0x68f   :  { %v1208_v13 = vadd.f32 %v1207_v37, %v1172_v52 }
 0x690   :  { %v1972_v38 = vpop.f32.mrf.mxu0 }
 0x691   :  { %v1219_v8 = vadd.f32 %v1972_v38, %v1172_v52 }
 0x692   :  { %v1210_v39 = vpop.f32.mrf.mxu0 }
 0x693   :  { %v1272_v11 = vpack.c.bf16 %v1219_v8, %v1216_v10  ;;  %v1211_v12 = vadd.f32 %v1210_v39, %v1172_v52 }
 0x694   :  { %v1975_v40 = vpop.f32.mrf.mxu0 }
 0x695   :  { %v1232_v5 = vadd.f32 %v1975_v40, %v1172_v52  ;;  %v1271_v2 = vpack.c.bf16 %v1211_v12, %v1208_v13 }
 0x696   :  { %v1223_v41 = vpop.f32.mrf.mxu0 }
 0x697   :  { %v1224_v48 = vadd.f32 %v1223_v41, %v1172_v52  ;;  %v1449_v41 = vsub.s32 4, %v2387_v25 }
 0x698   :  { %v1976_v42 = vpop.f32.mrf.mxu0 }
 0x699   :  { %v1235_v3 = vadd.f32 %v1976_v42, %v1172_v52  ;;  %v1450_v42 = vrot.slane %v2393_v27, %v1449_v41 }
 0x69a   :  { %v1226_v43 = vpop.f32.mrf.mxu0 }
 0x69b   :  { %v1274_v6 = vpack.c.bf16 %v1235_v3, %v1232_v5  ;;  %v1227_v7 = vadd.f32 %v1226_v43, %v1172_v52 }
 0x69c   :  { %v1979_v44 = vpop.f32.mrf.mxu0 }
 0x69d   :  { %v1248_v62 = vadd.f32 %v1979_v44, %v1172_v52  ;;  %v1273_v9 = vpack.c.bf16 %v1227_v7, %v1224_v48 }
 0x69e   :  { %v1239_v45 = vpop.f32.mrf.mxu0 }
 0x69f   :  { %v1240_v1 = vadd.f32 %v1239_v45, %v1172_v52 }
 0x6a0   :  { %v1980_v46 = vpop.f32.mrf.mxu0 }
 0x6a1   :  { %v1251_v60 = vadd.f32 %v1980_v46, %v1172_v52 }
 0x6a2   :  { %v1242_v47 = vpop.f32.mrf.mxu0 }
 0x6a3   :  { %v1276_v63 = vpack.c.bf16 %v1251_v60, %v1248_v62  ;;  %v1243_v0 = vadd.f32 %v1242_v47, %v1172_v52 }
 0x6a4   :  { %v1983_v50 = vpop.f32.mrf.mxu0 }
 0x6a5   :  { %v1264_v54 = vadd.f32 %v1983_v50, %v1172_v52  ;;  %v1275_v4 = vpack.c.bf16 %v1243_v0, %v1240_v1 }
 0x6a6   :  { %v1255_v51 = vpop.f32.mrf.mxu0 }
 0x6a7   :  { %v1256_v59 = vadd.f32 %v1255_v51, %v1172_v52 }
 0x6a8   :  { %v1984_v53 = vpop.f32.mrf.mxu0 }
 0x6a9   :  { %v1267_v55 = vadd.f32 %v1984_v53, %v1172_v52 }
 0x6aa   :  { %v1258_v56 = vpop.f32.mrf.mxu0 }
 0x6ab   :  { %v1278_v57 = vpack.c.bf16 %v1267_v55, %v1264_v54  ;;  %v1259_v58 = vadd.f32 %v1258_v56, %v1172_v52 }
 0x6ad   :  { %1986 = vmatpush3.bf16.msra.mxu1 %v1278_v57  ;;  %v1277_v61 = vpack.c.bf16 %v1259_v58, %v1256_v59 }
 0x6ae   :  { %1987 = vmatprep.subr.bf16.mxu1 %v2278_v29 }
 0x6b1   :  { %1988 = vmatpush3.bf16.msra.mxu1 %v1277_v61 }
 0x6b2   :  { %1989 = vmatprep.subr.bf16.mxu1 %v2278_v29 }
 0x6b5   :  { %1990 = vmatpush3.bf16.msra.mxu1 %v1276_v63 }
 0x6b6   :  { %1991 = vmatprep.subr.bf16.mxu1 %v2278_v29 }
 0x6b9   :  { %1992 = vmatpush3.bf16.msra.mxu1 %v1275_v4 }
 0x6ba   :  { %1993 = vmatprep.subr.bf16.mxu1 %v2278_v29 }
 0x6bd   :  { %1994 = vmatpush3.bf16.msra.mxu1 %v1274_v6 }
 0x6be   :  { %1995 = vmatprep.subr.bf16.mxu1 %v2278_v29 }
 0x6c1   :  { %1996 = vmatpush3.bf16.msra.mxu1 %v1273_v9 }
 0x6c2   :  { %1997 = vmatprep.subr.bf16.mxu1 %v2278_v29 }
 0x6c5   :  { %1998 = vmatpush3.bf16.msra.mxu1 %v1272_v11 }
 0x6c6   :  { %1999 = vmatprep.subr.bf16.mxu1 %v2278_v29 }
 0x6c9   :  { %2000 = vmatpush3.bf16.msra.mxu1 %v1271_v2 }
 0x6ca   :  { %2025 = vmatprep.subr.bf16.mxu1 %v2278_v29 }
 0x6cc   :  { %2002 = vmatmul.mubr.bf16.vlgmr.msra.gmra.mxu1 %v1270_v21 }
 0x6cd   :  { %2041 = vmatprep.mubr.msk.bf16.mxu1 %vm2279_vm0, %v2278_v29  ;;  %2026 = vmatpush3.bf16.msra.mxu1 %v2112_v23 }
 0x6ce   :  { %2027 = vmatprep.subr.bf16.mxu1 %v2278_v29 }
 0x6d1   :  { %2028 = vmatpush3.bf16.msra.mxu1 %v2113_v24 }
 0x6d2   :  { %2029 = vmatprep.subr.bf16.mxu1 %v2278_v29 }
 0x6d5   :  { %2030 = vmatpush3.bf16.msra.mxu1 %v2114_v26 }
 0x6d6   :  { %2031 = vmatprep.subr.bf16.mxu1 %v2278_v29 }
 0x6d9   :  { %2032 = vmatpush3.bf16.msra.mxu1 %v2115_v28 }
 0x6da   :  { %2033 = vmatprep.subr.bf16.mxu1 %v2278_v29 }
 0x6dd   :  { %2034 = vmatpush3.bf16.msra.mxu1 %v2116_v30 }
 0x6de   :  { %2035 = vmatprep.subr.bf16.mxu1 %v2278_v29 }
 0x6e1   :  { %2036 = vmatpush3.bf16.msra.mxu1 %v2117_v31 }
 0x6e2   :  { %2037 = vmatprep.subr.bf16.mxu1 %v2278_v29 }
 0x6e5   :  { %2038 = vmatpush3.bf16.msra.mxu1 %v2118_v15 }
 0x6e6   :  { %2039 = vmatprep.subr.bf16.mxu1 %v2278_v29 }
 0x6e9   :  { %2040 = vmatpush3.bf16.msra.mxu1 %v2119_v16 }
 0x78c   :  { %v1313_v32 = vpop.f32.mrf.mxu1 }
 0x78d   :  { %v1319_v33 = vpack.c.bf16 %v1313_v32, %v1313_v32 }
 0x78e   :  { %v2003_v34 = vpop.f32.mrf.mxu1 }
 0x78f   :  { %2022 = vmatmul.mubr.bf16.vlgmr.msra.gmra.mxu0 %v1319_v33 }
 0x790   :  { %v1316_v35 = vpop.f32.mrf.mxu1 }
 0x792   :  { %v2004_v14 = vpop.f32.mrf.mxu1 }
 0x84f   :  { %v1423_v19 = vpop.f32.mrf.mxu0 }
 0x850   :  { %v1424_v20 = vadd.f32 %v1423_v19, %v1340_v18 }
 0x851   :  { %v2023_v36 = vpop.f32.mrf.mxu0 }
 0x852   :  { %v1429_v37 = vmax.f32 %v1424_v20, 0.0 }
 0x853   :  { %v1426_v38 = vpop.f32.mrf.mxu0 }
 0x854   :  { %v1430_v39 = vpack.c.bf16 %v1429_v37, %v1429_v37 }
 0x855   :  { %v2024_v40 = vpop.f32.mrf.mxu0 }
 0x856   :  { %2042 = vmatmul.mubr.bf16.vlgmr.msra.gmra.mxu1 %v1430_v39 }
 0x916   :  { %v1533_v29 = vpop.f32.mrf.mxu1 }
 0x917   :  { %v1534_v43 = vadd.f32 %v1533_v29, %v1450_v42 }
 0x918   :  { %v2043_v44 = vpop.f32.mrf.mxu1 }
 0x919   :  { %1539 = vst [vmem:[#allocation13] sm:$0xff] %v1534_v43 }
 0x91a   :  { %v1536_v45 = vpop.f32.mrf.mxu1 }
 0x91b   :  { %2251 = shalt.err (!%p2248_p6)
}
 0x91c   :  { %1549 = dma.vmem_to_hbm [thread:$0]  %s1547_s11, 128, %s2463_s8, [#allocation4]   ;;  %v2044_v25 = vpop.f32.mrf.mxu1 }
 0x91d   :  { %2268 = dma.done.wait [#allocation4], 128  }
 0x91e   :  { %2269 = vsyncadd [#allocation4], 4294967168 }
 0x91f   :  { %1553 = vsyncpa [#allocation3], 1 }
 0x920   :  { %1554 = vsyncpa [#allocation6], 1 }
 0x921   :  { %1555 = vsyncpa [#allocation9], 1 }
 0x922   :  { %1556 = vsyncpa [#allocation12], 1 }
 0x923   :  { %1557 = vsyncpa [#allocation4], 1 }

</bundles_post_ra>
